<compile_context>
chip_gen: v7x
topology: tpu7x:2x2x1
jax: 0.10.0
libtpu: 0.0.40
codegen_flags: <defaults>
</compile_context>

<pallas_src>
import functools
import math

import jax
import jax.numpy as jnp
from jax.experimental import pallas as pl
from jax.experimental.pallas import tpu as pltpu

EPS = 1e-10
LOG_EPS = math.log(EPS)          # clip(p, EPS, .) in log space
LOG_1M_EPS = math.log1p(-EPS)    # clip(p, ., 1-EPS) in log space


def _pick_lane_tile(hw, c, itemsize):
    """Lane tile: multiple of 128, <= array extent, ~4 MiB logits per block."""
    if hw <= 128:
        return hw                              # single full-extent block
    budget = 4 * 1024 * 1024                   # logits bytes per grid step
    t = budget // max(1, c * itemsize)
    t = min(t, 64 * 1024, (hw // 128) * 128)
    return max(128, (t // 128) * 128)


def _pe_kernel(x_ref, t_ref, out_ref, acc_ref, *, ignore_index, hw, t_lane,
               tiles_per_split):
    """One (1, C, T) logits tile + (1, 1, T) targets tile -> accumulate
    (ce_sum, ent_sum, valid_count) lane-vectors into a (3, T) VMEM scratch;
    flush to the per-(n, split) output block at the last tile."""
    s_idx = pl.program_id(1)
    j = pl.program_id(2)

    @pl.when(j == 0)
    def _init():
        acc_ref[...] = jnp.zeros_like(acc_ref)

    x = x_ref[0].astype(jnp.float32)           # (C, T), lane-dense on T
    t = t_ref[0]                               # (1, T) int32, lane-dense

    # Global lane offset of this tile; lanes past the true HW extent (ragged
    # last tile / clamped over-split tiles) are masked out.
    off = (s_idx * tiles_per_split + j) * t_lane
    lane = jax.lax.broadcasted_iota(jnp.int32, (1, t_lane), 1)
    lane_valid = (off + lane) < hw             # (1, T) bool

    # Zero out-of-bounds logits BEFORE max/exp so garbage cannot become NaN.
    xm = jnp.where(lane_valid, x, 0.0)         # (C, T)

    valid = jnp.logical_and(lane_valid, t != ignore_index)
    mask = valid.astype(jnp.float32)           # (1, T)

    # logit of the target class: masked select-sum, no float one-hot multiply.
    row = jax.lax.broadcasted_iota(jnp.int32, xm.shape, 0)
    logit_y = jnp.sum(jnp.where(row == t, xm, 0.0), axis=0, keepdims=True)

    # Stable softmax / logsumexp over the small sublane C axis.
    mx = jnp.max(xm, axis=0, keepdims=True)    # (1, T)
    e = jnp.exp(xm - mx)                       # (C, T): single EUP op per elem
    ssum = jnp.sum(e, axis=0, keepdims=True)   # (1, T)
    lse = mx + jnp.log(ssum)                   # (1, T): per-lane, not per-elem

    ce = (lse - logit_y) * mask                # (1, T) lane-partial CE

    # Entropy with analytic log-softmax (no per-element log); clip preserves
    # the reference's clamp(p, EPS, 1-EPS) exactly (log is monotonic).
    inv_s = 1.0 / ssum                         # one divide per lane (not per elem)
    p = jnp.clip(e * inv_s, EPS, 1.0 - EPS)    # (C, T)
    logp = jnp.clip(xm - lse, LOG_EPS, LOG_1M_EPS)
    ent = jnp.sum(-p * logp, axis=0, keepdims=True) * mask   # (1, T)

    acc_ref[0:1] += ce
    acc_ref[1:2] += ent
    acc_ref[2:3] += mask

    @pl.when(j == pl.num_programs(2) - 1)
    def _flush():
        out_ref[0, 0] = acc_ref[...]


def penalty_entropy(inputs, targets, alpha=1.0, ignore_index=-100):
    """loss = CE(inputs, targets) - alpha * mean(-p * log p), p = softmax."""
    if inputs.ndim > 2:
        n, c = inputs.shape[0], inputs.shape[1]
        x3 = inputs.reshape(n, c, -1)          # free reshape, native NCHW layout
        t2 = targets.reshape(n, -1)
    else:
        # TODO(synk): a C-on-lanes kernel variant would avoid this materialized
        # transpose for the 2-D (M, C) path.
        m, c = inputs.shape
        n = 1
        x3 = inputs.T.reshape(1, c, m)
        t2 = targets.reshape(1, m)

    hw = x3.shape[-1]
    itemsize = jnp.dtype(x3.dtype).itemsize    # bf16 ships at native width
    t_lane = _pick_lane_tile(hw, c, itemsize)
    total_tiles = -(-hw // t_lane)

    # Feed both v7x TensorCores even when N == 1 by splitting the tile axis.
    splits = 2 if (n == 1 and total_tiles >= 2) else 1
    tiles_per_split = -(-total_tiles // splits)
    last_block = total_tiles - 1

    t3 = t2.reshape(n, 1, hw).astype(jnp.int32)

    kernel = functools.partial(
        _pe_kernel, ignore_index=int(ignore_index), hw=hw, t_lane=t_lane,
        tiles_per_split=tiles_per_split)

    def in_map(i, s, j):
        # Clamp: over-split steps re-read the last block but are fully masked.
        k = jnp.minimum(s * tiles_per_split + j, last_block)
        return (i, 0, k)

    partials = pl.pallas_call(
        kernel,
        out_shape=jax.ShapeDtypeStruct((n, splits, 3, t_lane), jnp.float32),
        grid_spec=pltpu.PrefetchScalarGridSpec(
            num_scalar_prefetch=0,
            grid=(n, splits, tiles_per_split),
            in_specs=[
                pl.BlockSpec((1, c, t_lane), in_map),
                pl.BlockSpec((1, 1, t_lane), in_map),
            ],
            out_specs=pl.BlockSpec((1, 1, 3, t_lane), lambda i, s, j: (i, s, 0, 0)),
            scratch_shapes=[pltpu.VMEM((3, t_lane), jnp.float32)],
        ),
        compiler_params=pltpu.CompilerParams(
            dimension_semantics=("parallel", "parallel", "arbitrary")),
    )(x3, t3)

    # Tiny (n, splits, 3, T) slab -> 3 scalars in the wrapper.
    sums = jnp.sum(partials, axis=(0, 1, 3))   # (3,): ce_sum, ent_sum, count
    count = sums[2]                            # NOTE: count==0 is undefined,
    loss_ce = sums[0] / count                  # matching the reference.
    loss_ent = sums[1] / (count * c)
    return loss_ce - alpha * loss_ent


def penalty_entropy_ref(inputs, targets, alpha=1.0, ignore_index=-100):
    """Pure-JAX reference mirroring the PyTorch module, for validation."""
    if inputs.ndim > 2:
        n, c = inputs.shape[0], inputs.shape[1]
        x = inputs.reshape(n, c, -1).transpose(0, 2, 1).reshape(-1, c)
        t = targets.reshape(-1)
    else:
        x, t = inputs, targets
    x = x.astype(jnp.float32)
    if ignore_index >= 0:
        keep = t != ignore_index
        x = x[keep]
        t = t[keep]
    lse = jax.scipy.special.logsumexp(x, axis=-1)
    logit_y = jnp.take_along_axis(x, t[:, None].astype(jnp.int32), axis=-1)[:, 0]
    loss_ce = jnp.mean(lse - logit_y)
    p = jax.nn.softmax(x, axis=-1)
    p = jnp.clip(p, EPS, 1.0 - EPS)
    loss_ent = jnp.mean(-p * jnp.log(p))
    return loss_ce - alpha * loss_ent


if __name__ == "__main__":
    key = jax.random.PRNGKey(0)
    k1, k2 = jax.random.split(key)

    # 1) Main case: NCHW logits, default ignore_index (no filtering).
    N, C, H, W = 2, 4, 16, 16
    inputs = jax.random.normal(k1, (N, C, H, W), dtype=jnp.float32)
    targets = jax.random.randint(k2, (N, H, W), 0, C, dtype=jnp.int32)
    loss = jax.block_until_ready(penalty_entropy(inputs, targets, alpha=1.0))
    ref = penalty_entropy_ref(inputs, targets, alpha=1.0)
    assert bool(jnp.isfinite(loss)), loss
    assert jnp.allclose(loss, ref, rtol=1e-4, atol=1e-4), (loss, ref)

    # 2) Ragged HW tail + N==1 split path + ignore_index filtering.
    N2, C2, H2, W2 = 1, 4, 18, 18            # hw=324 -> ragged 128-lane tiles
    x2 = jax.random.normal(k1, (N2, C2, H2, W2), dtype=jnp.float32)
    t2 = jax.random.randint(k2, (N2, H2, W2), 0, C2, dtype=jnp.int32)
    loss2 = jax.block_until_ready(
        penalty_entropy(x2, t2, alpha=0.5, ignore_index=2))
    ref2 = penalty_entropy_ref(x2, t2, alpha=0.5, ignore_index=2)
    assert bool(jnp.isfinite(loss2)), loss2
    assert jnp.allclose(loss2, ref2, rtol=1e-4, atol=1e-4), (loss2, ref2)

    print("KERNEL_OK")
</pallas_src>

<mosaic_0001>
module attributes {stable_mosaic.version = 11 : i64} {
  func.func @_pe_kernel(%arg0: i32, %arg1: i32, %arg2: i32, %arg3: memref<1x4x256xf32, #tpu.memory_space<vmem>>, %arg4: memref<1x1x256xi32, #tpu.memory_space<vmem>>, %arg5: memref<1x1x3x256xf32, #tpu.memory_space<vmem>>, %arg6: memref<3x256xf32, #tpu.memory_space<vmem>>) attributes {dimension_semantics = [#tpu.dimension_semantics<parallel>, #tpu.dimension_semantics<parallel>, #tpu.dimension_semantics<arbitrary>], iteration_bounds = array<i64: 2, 1, 1>, scalar_prefetch = 0 : i64, scratch_operands = 1 : i64, tpu.core_type = #tpu.core_type<tc>, window_params = [{transform_indices = @transform_0, window_bounds = array<i64: 1, 4, 256>}, {transform_indices = @transform_1, window_bounds = array<i64: 1, 1, 256>}, {transform_indices = @transform_2, window_bounds = array<i64: 1, 1, 3, 256>}]} {
    %c0_i32 = arith.constant 0 : i32
    %0 = arith.cmpi eq, %arg2, %c0_i32 : i32
    %1 = arith.extui %0 : i1 to i32
    %c0_i32_0 = arith.constant 0 : i32
    %2 = arith.cmpi ne, %1, %c0_i32_0 : i32
    scf.if %2 {
      %cst_30 = arith.constant 0.000000e+00 : f32
      %74 = vector.broadcast %cst_30 : f32 to vector<3x256xf32>
      %c0_31 = arith.constant 0 : index
      %c0_32 = arith.constant 0 : index
      %75 = vector.load %arg6[%c0_31, %c0_32] : memref<3x256xf32, #tpu.memory_space<vmem>>, vector<3x256xf32>
      tpu.vector_store %arg6[%c0_31, %c0_32], %74 {strides = array<i32>} : memref<3x256xf32, #tpu.memory_space<vmem>>, vector<3x256xf32>,
    } else {
    }
    %c0 = arith.constant 0 : index
    %c0_1 = arith.constant 0 : index
    %c0_2 = arith.constant 0 : index
    %3 = vector.load %arg3[%c0, %c0_1, %c0_2] : memref<1x4x256xf32, #tpu.memory_space<vmem>>, vector<1x4x256xf32>
    %4 = vector.shape_cast %3 : vector<1x4x256xf32> to vector<4x256xf32>
    %c0_3 = arith.constant 0 : index
    %c0_4 = arith.constant 0 : index
    %c0_5 = arith.constant 0 : index
    %5 = vector.load %arg4[%c0_3, %c0_4, %c0_5] : memref<1x1x256xi32, #tpu.memory_space<vmem>>, vector<1x1x256xi32>
    %6 = vector.shape_cast %5 : vector<1x1x256xi32> to vector<1x256xi32>
    %c1_i32 = arith.constant 1 : i32
    %7 = arith.muli %arg1, %c1_i32 : i32
    %8 = arith.addi %7, %arg2 : i32
    %c256_i32 = arith.constant 256 : i32
    %9 = arith.muli %8, %c256_i32 : i32
    %10 = tpu.iota {dimensions = array<i32: 1>} : vector<1x256xi32>
    %11 = vector.broadcast %9 : i32 to vector<1x256xi32>
    %12 = arith.addi %11, %10 : vector<1x256xi32>
    %c256_i32_6 = arith.constant 256 : i32
    %13 = vector.broadcast %c256_i32_6 : i32 to vector<1x256xi32>
    %14 = arith.cmpi slt, %12, %13 : vector<1x256xi32>
    %cst = arith.constant 0.000000e+00 : f32
    %15 = vector.shape_cast %14 : vector<1x256xi1> to vector<1x256xi1>
    %16 = vector.broadcast %15 : vector<1x256xi1> to vector<4x256xi1>
    %17 = vector.broadcast %cst : f32 to vector<4x256xf32>
    %18 = arith.select %16, %4, %17 : vector<4x256xi1>, vector<4x256xf32>
    %c-100_i32 = arith.constant -100 : i32
    %19 = vector.broadcast %c-100_i32 : i32 to vector<1x256xi32>
    %20 = arith.cmpi ne, %6, %19 : vector<1x256xi32>
    %21 = arith.andi %14, %20 : vector<1x256xi1>
    %22 = arith.extui %21 : vector<1x256xi1> to vector<1x256xi32>
    %23 = arith.sitofp %22 : vector<1x256xi32> to vector<1x256xf32>
    %24 = tpu.iota {dimensions = array<i32: 0>} : vector<4x256xi32>
    %25 = vector.broadcast %6 : vector<1x256xi32> to vector<4x256xi32>
    %26 = arith.cmpi eq, %24, %25 : vector<4x256xi32>
    %cst_7 = arith.constant 0.000000e+00 : f32
    %27 = vector.broadcast %cst_7 : f32 to vector<4x256xf32>
    %28 = arith.select %26, %18, %27 : vector<4x256xi1>, vector<4x256xf32>
    %cst_8 = arith.constant dense<0.000000e+00> : vector<256xf32>
    %29 = vector.multi_reduction <add>, %28, %cst_8 [0] : vector<4x256xf32> to vector<256xf32>
    %30 = vector.shape_cast %29 : vector<256xf32> to vector<1x256xf32>
    %cst_9 = arith.constant dense<0xFF800000> : vector<256xf32>
    %31 = vector.multi_reduction <maximumf>, %18, %cst_9 [0] : vector<4x256xf32> to vector<256xf32>
    %32 = vector.shape_cast %31 : vector<256xf32> to vector<1x256xf32>
    %33 = vector.broadcast %32 : vector<1x256xf32> to vector<4x256xf32>
    %34 = arith.subf %18, %33 : vector<4x256xf32>
    %35 = math.exp %34 : vector<4x256xf32>
    %cst_10 = arith.constant dense<0.000000e+00> : vector<256xf32>
    %36 = vector.multi_reduction <add>, %35, %cst_10 [0] : vector<4x256xf32> to vector<256xf32>
    %37 = vector.shape_cast %36 : vector<256xf32> to vector<1x256xf32>
    %38 = math.log %37 : vector<1x256xf32>
    %39 = arith.addf %32, %38 : vector<1x256xf32>
    %40 = arith.subf %39, %30 : vector<1x256xf32>
    %41 = arith.mulf %40, %23 : vector<1x256xf32>
    %cst_11 = arith.constant 1.000000e+00 : f32
    %42 = vector.broadcast %cst_11 : f32 to vector<1x256xf32>
    %43 = arith.divf %42, %37 : vector<1x256xf32>
    %44 = vector.broadcast %43 : vector<1x256xf32> to vector<4x256xf32>
    %45 = arith.mulf %35, %44 : vector<4x256xf32>
    %cst_12 = arith.constant 1.000000e-10 : f32
    %cst_13 = arith.constant 1.000000e+00 : f32
    %46 = vector.broadcast %cst_12 : f32 to vector<4x256xf32>
    %47 = arith.maximumf %46, %45 : vector<4x256xf32>
    %48 = vector.broadcast %cst_13 : f32 to vector<4x256xf32>
    %49 = arith.minimumf %48, %47 : vector<4x256xf32>
    %50 = vector.broadcast %39 : vector<1x256xf32> to vector<4x256xf32>
    %51 = arith.subf %18, %50 : vector<4x256xf32>
    %cst_14 = arith.constant -23.0258503 : f32
    %cst_15 = arith.constant -1.000000e-10 : f32
    %52 = vector.broadcast %cst_14 : f32 to vector<4x256xf32>
    %53 = arith.maximumf %52, %51 : vector<4x256xf32>
    %54 = vector.broadcast %cst_15 : f32 to vector<4x256xf32>
    %55 = arith.minimumf %54, %53 : vector<4x256xf32>
    %cst_16 = arith.constant 0.000000e+00 : f32
    %56 = vector.broadcast %cst_16 : f32 to vector<4x256xf32>
    %57 = arith.subf %56, %49 : vector<4x256xf32>
    %58 = arith.mulf %57, %55 : vector<4x256xf32>
    %cst_17 = arith.constant dense<0.000000e+00> : vector<256xf32>
    %59 = vector.multi_reduction <add>, %58, %cst_17 [0] : vector<4x256xf32> to vector<256xf32>
    %60 = vector.shape_cast %59 : vector<256xf32> to vector<1x256xf32>
    %61 = arith.mulf %60, %23 : vector<1x256xf32>
    %c0_18 = arith.constant 0 : index
    %c0_19 = arith.constant 0 : index
    %62 = vector.load %arg6[%c0_18, %c0_19] : memref<3x256xf32, #tpu.memory_space<vmem>>, vector<1x256xf32>
    %63 = arith.addf %62, %41 : vector<1x256xf32>
    %c0_20 = arith.constant 0 : index
    %c0_21 = arith.constant 0 : index
    %64 = vector.load %arg6[%c0_20, %c0_21] : memref<3x256xf32, #tpu.memory_space<vmem>>, vector<1x256xf32>
    tpu.vector_store %arg6[%c0_20, %c0_21], %63 {strides = array<i32>} : memref<3x256xf32, #tpu.memory_space<vmem>>, vector<1x256xf32>,
    %c1 = arith.constant 1 : index
    %c0_22 = arith.constant 0 : index
    %65 = vector.load %arg6[%c1, %c0_22] : memref<3x256xf32, #tpu.memory_space<vmem>>, vector<1x256xf32>
    %66 = arith.addf %65, %61 : vector<1x256xf32>
    %c1_23 = arith.constant 1 : index
    %c0_24 = arith.constant 0 : index
    %67 = vector.load %arg6[%c1_23, %c0_24] : memref<3x256xf32, #tpu.memory_space<vmem>>, vector<1x256xf32>
    tpu.vector_store %arg6[%c1_23, %c0_24], %66 {strides = array<i32>} : memref<3x256xf32, #tpu.memory_space<vmem>>, vector<1x256xf32>,
    %c2 = arith.constant 2 : index
    %c0_25 = arith.constant 0 : index
    %68 = vector.load %arg6[%c2, %c0_25] : memref<3x256xf32, #tpu.memory_space<vmem>>, vector<1x256xf32>
    %69 = arith.addf %68, %23 : vector<1x256xf32>
    %c2_26 = arith.constant 2 : index
    %c0_27 = arith.constant 0 : index
    %70 = vector.load %arg6[%c2_26, %c0_27] : memref<3x256xf32, #tpu.memory_space<vmem>>, vector<1x256xf32>
    tpu.vector_store %arg6[%c2_26, %c0_27], %69 {strides = array<i32>} : memref<3x256xf32, #tpu.memory_space<vmem>>, vector<1x256xf32>,
    %c0_i32_28 = arith.constant 0 : i32
    %71 = arith.cmpi eq, %arg2, %c0_i32_28 : i32
    %72 = arith.extui %71 : i1 to i32
    %c0_i32_29 = arith.constant 0 : i32
    %73 = arith.cmpi ne, %72, %c0_i32_29 : i32
    scf.if %73 {
      %c0_30 = arith.constant 0 : index
      %c0_31 = arith.constant 0 : index
      %74 = vector.load %arg6[%c0_30, %c0_31] : memref<3x256xf32, #tpu.memory_space<vmem>>, vector<3x256xf32>
      %c0_32 = arith.constant 0 : index
      %c0_33 = arith.constant 0 : index
      %c0_34 = arith.constant 0 : index
      %c0_35 = arith.constant 0 : index
      %75 = vector.load %arg5[%c0_32, %c0_33, %c0_34, %c0_35] : memref<1x1x3x256xf32, #tpu.memory_space<vmem>>, vector<1x1x3x256xf32>
      %76 = vector.shape_cast %75 : vector<1x1x3x256xf32> to vector<3x256xf32>
      %77 = vector.shape_cast %74 : vector<3x256xf32> to vector<1x1x3x256xf32>
      tpu.vector_store %arg5[%c0_32, %c0_33, %c0_34, %c0_35], %77 {strides = array<i32>} : memref<1x1x3x256xf32, #tpu.memory_space<vmem>>, vector<1x1x3x256xf32>,
    } else {
    }
    return
  }
  func.func @transform_0(%arg0: i32, %arg1: i32, %arg2: i32) -> (i32, i32, i32) {
    %c1_i32 = arith.constant 1 : i32
    %0 = arith.muli %arg1, %c1_i32 : i32
    %1 = arith.addi %0, %arg2 : i32
    %c0_i32 = arith.constant 0 : i32
    %2 = arith.minsi %1, %c0_i32 : i32
    %c0_i32_0 = arith.constant 0 : i32
    %c0_i32_1 = arith.constant 0 : i32
    return %arg0, %c0_i32_0, %2 : i32, i32, i32
  }
  func.func @transform_1(%arg0: i32, %arg1: i32, %arg2: i32) -> (i32, i32, i32) {
    %c1_i32 = arith.constant 1 : i32
    %0 = arith.muli %arg1, %c1_i32 : i32
    %1 = arith.addi %0, %arg2 : i32
    %c0_i32 = arith.constant 0 : i32
    %2 = arith.minsi %1, %c0_i32 : i32
    %c0_i32_0 = arith.constant 0 : i32
    %c0_i32_1 = arith.constant 0 : i32
    return %arg0, %c0_i32_0, %2 : i32, i32, i32
  }
  func.func @transform_2(%arg0: i32, %arg1: i32, %arg2: i32) -> (i32, i32, i32, i32) {
    %c0_i32 = arith.constant 0 : i32
    %c0_i32_0 = arith.constant 0 : i32
    %c0_i32_1 = arith.constant 0 : i32
    return %arg0, %arg1, %c0_i32, %c0_i32_0 : i32, i32, i32, i32
  }
}

</mosaic_0001>

<bundles_post_ra>
// kernel: tpu_custom_call.1
= control target key start
LH: loop header
LB: loop body
LE: loop exit
PB: predicated region body
PF: predicated region fallthrough
CT: control target
= control target key end

     0   :  { %7 = vsyncpa [#allocation4], 0  ;;  %s1067_s0 = inlined_call_operand.hbm [shape: f32[2,4,256], index: 0, kind: input, shape index: {}]   ;;  %s1068_s1 = inlined_call_operand.hbm [shape: s32[2,1,256], index: 1, kind: input, shape index: {}]   ;;  %s1069_s2 = inlined_call_operand.vmem [shape: f32[2,1,3,256], index: 2, kind: output, shape index: {}]  }
   0x1   :  { %9 = vsyncpa [#allocation4 + $0x1], 0 }
   0x2   :  { %10 = vsyncpa [#allocation6], 0 }
   0x3   :  { %12 = vsyncpa [#allocation6 + $0x1], 0  ;;  %s851_s9 = smov 0   ;;  %s853_s10 = smov 0  }
   0x4   :  { %s855_s11 = smov 0   ;;  %s857_s12 = smov 0  }
   0x5   :  { %s859_s13 = smov 0   ;;  %s861_s14 = smov 0  }
   0x6 LB: > { %s617_s15 = sadd.s32 4294967295, %s829_s14   ;;  %s37_s16 = sadd.s32 1, %s825_s13  ;;  %s829_s14 = sphi %s861_s14, %s18_s14   ;;  %s825_s13 = sphi %s859_s13, %s1085_s13   ;;  %s821_s12 = sphi %s857_s12, %s1084_s12   ;;  %s817_s11 = sphi %s855_s11, %s1083_s11   ;;  %s813_s10 = sphi %s853_s10, %s1082_s10   ;;  %s809_s9 = sphi %s851_s9, %s1081_s9  }
   0x7   : > { %p39_p0 = scmp.ge.s32.totalorder %s37_s16, 2  ;;  %s52_s17 = sadd.s32 1, %s817_s11 }
   0x8   : > { %p59_p1 = scmp.ne.s32.totalorder %s817_s11, %s813_s10  ;;  %p60_p2 = scmp.eq.s32.totalorder %s829_s14, 0 }
   0x9   : > { %s1087_s16 = smov (%p39_p0, %s37_s16), 0  ;;  %p65_p4 = scmp.ne.s32.totalorder %s813_s10, %s809_s9 }
   0xa   : > { %p887_p3 = por %p60_p2, %p59_p1  ;;  %s47_s19 = ssub.s32 %s825_s13, %s1087_s16 }
   0xb   : > { %p66_p5 = scmp.eq.s32.totalorder %s617_s15, 0  ;;  %p50_p6 = scmp.eq.s32.totalorder %s47_s19, 0 }
   0xc   : > { %p650_p8 = scmp.lt.s32.totalorder %s829_s14, 2  ;;  %s903_s22 = sand.u32 1, %s817_s11  }
   0xd   : > { %p894_p7 = por %p66_p5, %p65_p4  ;;  %s636_s23 = sshll.u32 %s825_s13, 7 }
   0xe   : > { %s900_s21 = scalar_select %p50_p6, %s817_s11, %s52_s17  }
   0xf   : > { %s1072_s20 = scalar_select %p894_p7, 1, 0 }
  0x10   : > { %s621_s24 = sshll.u32 %s903_s22, 3  ;;  %s910_s27 = scalar_lea.hbm %s1067_s0, %s636_s23 }
  0x11   : > { %s155_s28 = scalar_lea.vmem [#allocation3], %s621_s24  ;;  %p914_p9 = pnand %p650_p8, %p887_p3 }
  0x12   : > { %s168_s29 = sshll.u32 %s155_s28, 4  ;;  %s152_s3 = scalar_lea.sflag [#allocation4], %s903_s22  ;;  %s918_s29 = int_to_ptr.vmem [resolvable:$true] %s168_s29 }
  0x13   : > { %s715_s4 = scalar_lea.hbm %s910_s27, 128  ;;  %p717_p13 = pneg %p914_p9 }
  0x14   : > { %p716_p12 = scmp.ne.s32.totalorder %s910_s27, %s715_s4  ;;  %s720_s7 = scalar_lea.hbm %s1067_s0, 256 }
  0x15   : > { %p721_p2 = scmp.lt.u32.totalorder %s910_s27, %s1067_s0  ;;  %p722_p3 = scmp.lt.u32.totalorder %s720_s7, %s715_s4 }
  0x16   : > { %p718_p0 = pnand %p717_p13, %p716_p12  ;;  %p724_p5 = scmp.lt.u32.totalorder %s715_s4, %s910_s27 }
  0x17   : > { %p723_p4 = por %p722_p3, %p721_p2 }
  0x18   : > { %p719_p1 = pneg %p718_p0 }
  0x19   : > { %p725_p6 = por %p724_p5, %p723_p4 }
  0x1b   : > { %p726_p8 = pnand %p725_p6, %p719_p1 }
  0x1d   : > { %729 = shalt.err (!%p726_p8)
}
  0x1e   : > { %s730_s15 = scalar_lea.vmem %s918_s29, 128  ;;  %s831_s17 = smov [#allocation3]  }
  0x1f   : > { %p731_p12 = scmp.ne.s32.totalorder %s918_s29, %s730_s15  ;;  %s735_s18 = sshll.u32 %s831_s17, 4  ;;  %s736_s18 = int_to_ptr.vmem [resolvable:$false] %s735_s18 }
  0x20   : > { %s737_s19 = scalar_lea.vmem %s736_s18, 256  ;;  %p738_p11 = scmp.lt.s32.totalorder %s918_s29, %s736_s18 }
  0x21   : > { %p733_p0 = pnand %p731_p12, %p717_p13  ;;  %p739_p2 = scmp.lt.s32.totalorder %s737_s19, %s730_s15 }
  0x23   : > { %p734_p10 = pneg %p733_p0  ;;  %p740_p3 = por %p739_p2, %p738_p11 }
  0x25   : > { %p741_p4 = pnand %p740_p3, %p734_p10 }
  0x27   : > { %744 = shalt.err (!%p741_p4)
}
  0x28   : > { %646 = dma.hbm_to_vmem [thread:$0]  (!%p914_p9), %s910_s27, 128, %s918_s29, %s152_s3  }
  0x29   : > { %p1074_p1 = scmp.lt.s32.totalorder %s829_s14, 3  ;;  %p1075_p5 = scmp.ge.s32.totalorder %s829_s14, 1 }
  0x2a   : > { %s624_s24 = sshll.u32 %s903_s22, 1  ;;  %s637_s25 = sshll.u32 %s825_s13, 5 }
  0x2b   : > { %p952_p6 = pnand %p1075_p5, %p1074_p1  ;;  %s961_s4 = scalar_lea.hbm %s1068_s1, %s637_s25 }
  0x2c   : > { %s179_s5 = scalar_lea.vmem [#allocation5], %s624_s24  ;;  %s176_s27 = scalar_lea.sflag [#allocation6], %s903_s22 }
  0x2d   : > { %s1076_s23 = scalar_select %p952_p6, 1, 0 }
  0x2e   : > { %s192_s6 = sshll.u32 %s179_s5, 4  ;;  %s745_s29 = scalar_lea.hbm %s961_s4, 32  ;;  %s193_s6 = int_to_ptr.vmem [resolvable:$true] %s192_s6 }
  0x2f   : > { %p746_p10 = scmp.ne.s32.totalorder %s961_s4, %s745_s29  ;;  %s750_s8 = scalar_lea.hbm %s1068_s1, 64 }
  0x30   : > { %p751_p12 = scmp.lt.u32.totalorder %s961_s4, %s1068_s1  ;;  %p752_p0 = scmp.lt.u32.totalorder %s750_s8, %s745_s29 }
  0x31   : > { %p748_p11 = pnand %p746_p10, %p717_p13  ;;  %p754_p3 = scmp.lt.u32.totalorder %s745_s29, %s961_s4 }
  0x32   : > { %p753_p2 = por %p752_p0, %p751_p12 }
  0x33   : > { %p749_p8 = pneg %p748_p11 }
  0x34   : > { %p755_p4 = por %p754_p3, %p753_p2 }
  0x36   : > { %p756_p1 = pnand %p755_p4, %p749_p8 }
  0x38   : > { %759 = shalt.err (!%p756_p1)
}
  0x39   : > { %s760_s22 = scalar_lea.vmem %s193_s6, 32  ;;  %s832_s17 = smov [#allocation5]  }
  0x3a   : > { %p761_p5 = scmp.ne.s32.totalorder %s193_s6, %s760_s22  ;;  %s765_s18 = sshll.u32 %s832_s17, 4  ;;  %s766_s18 = int_to_ptr.vmem [resolvable:$false] %s765_s18 }
  0x3b   : > { %s767_s19 = scalar_lea.vmem %s766_s18, 64  ;;  %p768_p7 = scmp.lt.s32.totalorder %s193_s6, %s766_s18 }
  0x3c   : > { %p763_p10 = pnand %p761_p5, %p717_p13  ;;  %p769_p6 = scmp.lt.s32.totalorder %s767_s19, %s760_s22 }
  0x3e   : > { %p764_p11 = pneg %p763_p10  ;;  %p770_p0 = por %p769_p6, %p768_p7 }
  0x40   : > { %p771_p12 = pnand %p770_p0, %p764_p11 }
  0x42   : > { %774 = shalt.err (!%p771_p12)
}
  0x43   : > { %649 = dma.hbm_to_vmem [thread:$0]  (!%p914_p9), %s961_s4, 32, %s193_s6, %s176_s27  }
  0x44   : > { %p1077_p8 = scmp.ne.s32.totalorder %s1076_s23, 0 }
  0x45   : > { %s203_s24 = sand.u32 (!%p1077_p8), 1, %s813_s10   ;;  %p1078_p13 = scmp.ne.s32.totalorder (!%p1077_p8), %s1072_s20, 0 }
  0x46   : > { %201 = sbr.rel (%p1077_p8) target bundleno = 180 (0xb4), region = 28  ;;  %s628_s25 = sshll.u32 (!%p1077_p8), %s203_s24, 3 }
  0x47   : > { %s204_s26 = scalar_lea.sflag (!%p1077_p8), [#allocation4], %s203_s24  ;;  %s207_s28 = scalar_lea.vmem (!%p1077_p8), [#allocation3], %s628_s25 }
  0x4d   : > { %800 = dma.done.wait (%p1078_p13), %s204_s26, 128  }
  0x4e   : > { %802 = vsyncadd (%p1078_p13), %s204_s26, 4294967168  ;;  %s629_s5 = sshll.u32 %s203_s24, 1  ;;  %s213_s29 = scalar_lea.sflag [#allocation6], %s203_s24 }
  0x4f   : > { %s216_s30 = scalar_lea.vmem [#allocation5], %s629_s5 }
  0x50   : > { %804 = dma.done.wait (%p1078_p13), %s213_s29, 32  }
  0x51   : > { %806 = vsyncadd (%p1078_p13), %s213_s29, 4294967264  ;;  %v291_v0 = vlaneseq  ;;  %v833_v1 = vmov 0.0   ;;  %v834_v3 = vmov 1966171168   ;;  %vm321_vm0 = vcmask 1043456   ;;  %v994_v5 = vld [vmem:[%s207_s28] sm:$0xff] }
  0x52   : > { %267 = vst [vmem:[#allocation2] sm:$0x77] %v833_v1  ;;  %v421_v4 = vunpack.c.l.s4 %v834_v3  ;;  %v269_v6 = vld [vmem:[%s216_s30] sm:$0x3]  ;;  %v998_v8 = vcombine.high %v994_v5, %v994_v5  ;;  %v835_v11 = vmov 0   ;;  %v336_v13 = vsel %vm321_vm0, %v994_v5, -inf }
  0x53   : > { %v292_v2 = vshrl.u32 %v291_v0, 7  ;;  %vm289_vm1 = vcmp.ne.s32.totalorder %v269_v6, 4294967196  ;;  %v337_v16 = vrot.slane %v336_v13, 4  ;;  %vm1014_vm4 = vcmp.lt.s32.totalorder %v291_v0, 256  ;;  %p254_p7 = scmp.lt.s32.totalorder %s821_s12, 1 }
  0x54   : > { %v422_v10 = vunpack.c.0.s8 %v421_v4  ;;  %v290_v12 = vsel %vm289_vm1, 1, %v835_v11  ;;  %v343_v17 = vsel %vm321_vm0, %v998_v8, -inf }
  0x55   : > { %v293_v7 = vsub.s32 0, %v292_v2  ;;  %v297_v9 = vsub.s32 1, %v292_v2  ;;  %v338_v21 = vmax.f32 %v336_v13, %v337_v16  ;;  %v344_v22 = vrot.slane %v343_v17, 4  ;;  %s1089_s12 = smov (!%p254_p7, %s821_s12), 1 }
  0x56   : > { %v1004_v18 = vsub.s32 %v422_v10, %v292_v2  ;;  %s638_s20 = sshll.u32 %s1089_s12, 3 }
  0x57   : > { %v294_v14 = vrot.slane %v290_v12, %v293_v7  ;;  %v298_v15 = vrot.slane %v290_v12, %v297_v9  ;;  %v339_v24 = vrot.slane %v338_v21, 2  ;;  %v345_v25 = vmax.f32 %v343_v17, %v344_v22  ;;  %s262_s6 = scalar_lea.vmem %s1069_s2, %s638_s20 }
  0x58   : > { %v312_v42 = vrot.slane %v269_v6, %v293_v7  ;;  %v316_v43 = vrot.slane %v269_v6, %v297_v9 }
  0x59   : > { %vm299_vm2 = vcmp.ne.s32.totalorder %v294_v14, 0  ;;  %vm300_vm3 = vcmp.ne.s32.totalorder %v298_v15, 0  ;;  %v464_v27 = vld [vmem:[#allocation2 + $0x2] ss:$4 sm:$0x3]  ;;  %v340_v28 = vmax.f32 %v338_v21, %v339_v24  ;;  %v346_v29 = vrot.slane %v345_v25, 2 }
  0x5a   : > { %v1006_v19 = vsel %vm299_vm2, 1.0, %v833_v1  ;;  %v1008_v20 = vsel %vm300_vm3, 1.0, %v833_v1  ;;  %vm317_vm5 = vcmp.eq.s32.totalorder %v292_v2, %v312_v42  ;;  %vm318_vm6 = vcmp.eq.s32.totalorder %v292_v2, %v316_v43 }
  0x5b   : > { %v467_v23 = vcombine.low %v1006_v19, %v1008_v20  ;;  %v341_v32 = vrot.slane %v340_v28, 1  ;;  %v347_v33 = vmax.f32 %v345_v25, %v346_v29  ;;  %v319_v44 = vsel %vm317_vm5, %v994_v5, 0.0 }
  0x5c   : > { %v320_v46 = vsel %vm318_vm6, %v998_v8, 0.0  ;;  %v322_v49 = vsel %vm321_vm0, %v319_v44, 0.0 }
  0x5d   : > { %v474_v26 = vrot.slane %v467_v23, %v1004_v18  ;;  %v342_v35 = vmax.f32 %v340_v28, %v341_v32  ;;  %v348_v36 = vrot.slane %v347_v33, 1  ;;  %v329_v52 = vsel %vm321_vm0, %v320_v46, 0.0 }
  0x5e   : > { %v323_v55 = vrot.slane %v322_v49, 4  ;;  %v330_v58 = vrot.slane %v329_v52, 4 }
  0x5f   : > { %v481_v30 = vrot.slane %v474_v26, %v1004_v18  ;;  %v349_v37 = vmax.f32 %v347_v33, %v348_v36  ;;  %v350_v38 = vsub.f32 %v994_v5, %v342_v35 }
  0x60   : > { %v324_v61 = vadd.f32 %v323_v55, %v322_v49  ;;  %v331_v0 = vadd.f32 %v330_v58, %v329_v52  ;;  %v416_v49 = vld [vmem:[#allocation2] ss:$4 sm:$0x3] }
  0x61   : > { %v483_v34 = vadd.f32 %v481_v30, %v464_v27  ;;  %v351_v39 = vsub.f32 %v998_v8, %v349_v37  ;;  %v352_v40 = vmul.f32 1.442695, %v350_v38 }
  0x62   : > { %v325_v3 = vrot.slane %v324_v61, 2  ;;  %v332_v6 = vrot.slane %v331_v0, 2 }
  0x63   : > { %484 = vst.msk [vmem:[#allocation2 + $0x2] ss:$4 sm:$0x3] %vm1014_vm4, %v483_v34  ;;  %703 = vpow2.f32 %v352_v40  ;;  %v354_v41 = vmul.f32 1.442695, %v351_v39 }
  0x64   : > { %v326_v7 = vadd.f32 %v325_v3, %v324_v61  ;;  %v333_v9 = vadd.f32 %v332_v6, %v331_v0  ;;  %v442_v3 = vld [vmem:[#allocation2 + $0x1] ss:$4 sm:$0x3] }
  0x65   : > { %705 = vpow2.f32 %v354_v41 }
  0x66   : > { %v327_v10 = vrot.slane %v326_v7, 1  ;;  %v334_v11 = vrot.slane %v333_v9, 1 }
  0x68   : > { %v328_v14 = vadd.f32 %v327_v10, %v326_v7  ;;  %v335_v22 = vadd.f32 %v334_v11, %v333_v9 }
  0x6d   : > { %v704_v45 = vpop.eup %703 }
  0x6e   : > { %v356_v47 = vsel %vm321_vm0, %v704_v45, 0.0 }
  0x6f   : > { %v706_v48 = vpop.eup %705  ;;  %v357_v50 = vrot.slane %v356_v47, 4 }
  0x70   : > { %v363_v51 = vsel %vm321_vm0, %v706_v48, 0.0 }
  0x71   : > { %v358_v53 = vadd.f32 %v357_v50, %v356_v47  ;;  %v364_v54 = vrot.slane %v363_v51, 4 }
  0x73   : > { %v359_v56 = vrot.slane %v358_v53, 2  ;;  %v365_v57 = vadd.f32 %v364_v54, %v363_v51 }
  0x75   : > { %v360_v59 = vadd.f32 %v359_v56, %v358_v53  ;;  %v366_v60 = vrot.slane %v365_v57, 2 }
  0x77   : > { %v361_v62 = vrot.slane %v360_v59, 1  ;;  %v367_v63 = vadd.f32 %v366_v60, %v365_v57 }
  0x79   : > { %v362_v1 = vadd.f32 %v361_v62, %v360_v59  ;;  %v368_v2 = vrot.slane %v367_v63, 1 }
  0x7b   : > { %v369_v4 = vadd.f32 %v368_v2, %v367_v63  ;;  %707 = vlog2.f32 %v362_v1 }
  0x7c   : > { %709 = vrcp.f32 %v362_v1 }
  0x7d   : > { %711 = vlog2.f32 %v369_v4 }
  0x7e   : > { %713 = vrcp.f32 %v369_v4 }
  0x85   : > { %v708_v12 = vpop.eup %707 }
  0x86   : > { %v710_v13 = vpop.eup %709  ;;  %v371_v15 = vmul.f32 0.6931472, %v708_v12 }
  0x87   : > { %v712_v16 = vpop.eup %711  ;;  %v384_v17 = vmul.f32 %v710_v13, %v704_v45 }
  0x88   : > { %v714_v21 = vpop.eup %713  ;;  %v373_v23 = vmul.f32 0.6931472, %v712_v16  ;;  %v374_v24 = vadd.f32 %v371_v15, %v342_v35 }
  0x89   : > { %v385_v25 = vmul.f32 %v714_v21, %v706_v48  ;;  %v386_v26 = vmax.f32 %v384_v17, 1e-10 }
  0x8a   : > { %v375_v27 = vadd.f32 %v373_v23, %v349_v37  ;;  %v376_v28 = vsub.f32 %v374_v24, %v328_v14  ;;  %v390_v29 = vsub.f32 %v994_v5, %v374_v24 }
  0x8b   : > { %v387_v30 = vmax.f32 %v385_v25, 1e-10  ;;  %v388_v32 = vmin.f32 %v386_v26, 1.0 }
  0x8c   : > { %v377_v33 = vsub.f32 %v375_v27, %v335_v22  ;;  %v378_v34 = vmul.f32 %v1006_v19, %v376_v28  ;;  %v391_v36 = vsub.f32 %v998_v8, %v375_v27  ;;  %v392_v38 = vmax.f32 %v390_v29, -23.02585 }
  0x8d   : > { %v389_v39 = vmin.f32 %v387_v30, 1.0  ;;  %v396_v40 = vsub.f32 0.0, %v388_v32 }
  0x8e   : > { %v379_v41 = vmul.f32 %v1008_v20, %v377_v33  ;;  %v393_v42 = vmax.f32 %v391_v36, -23.02585  ;;  %v394_v35 = vmin.f32 %v392_v38, -1e-10 }
  0x8f   : > { %v397_v43 = vsub.f32 0.0, %v389_v39 }
  0x90   : > { %v395_v44 = vmin.f32 %v393_v42, -1e-10  ;;  %v398_v37 = vmul.f32 %v396_v40, %v394_v35  ;;  %v419_v45 = vcombine.low %v378_v34, %v379_v41 }
  0x92   : > { %v399_v46 = vmul.f32 %v397_v43, %v395_v44  ;;  %v400_v5 = vsel %vm321_vm0, %v398_v37, 0.0  ;;  %v426_v47 = vrot.slane %v419_v45, %v1004_v18 }
  0x93   : > { %v401_v48 = vrot.slane %v400_v5, 4 }
  0x94   : > { %v407_v8 = vsel %vm321_vm0, %v399_v46, 0.0  ;;  %v433_v50 = vrot.slane %v426_v47, %v1004_v18 }
  0x95   : > { %v402_v51 = vadd.f32 %v401_v48, %v400_v5  ;;  %v408_v52 = vrot.slane %v407_v8, 4 }
  0x96   : > { %v435_v53 = vadd.f32 %v433_v50, %v416_v49 }
  0x97   : > { %v403_v54 = vrot.slane %v402_v51, 2  ;;  %v409_v55 = vadd.f32 %v408_v52, %v407_v8 }
  0x98   : > { %440 = vst.msk [vmem:[#allocation2] ss:$4 sm:$0x3] %vm1014_vm4, %v435_v53 }
  0x99   : > { %v404_v56 = vadd.f32 %v403_v54, %v402_v51  ;;  %v410_v57 = vrot.slane %v409_v55, 2 }
  0x9b   : > { %v405_v58 = vrot.slane %v404_v56, 1  ;;  %v411_v59 = vadd.f32 %v410_v57, %v409_v55 }
  0x9d   : > { %v406_v60 = vadd.f32 %v405_v58, %v404_v56  ;;  %v412_v61 = vrot.slane %v411_v59, 1 }
  0x9f   : > { %v413_v62 = vadd.f32 %v412_v61, %v411_v59  ;;  %v414_v63 = vmul.f32 %v1006_v19, %v406_v60 }
  0xa1   : > { %v415_v0 = vmul.f32 %v1008_v20, %v413_v62 }
  0xa3   : > { %v445_v1 = vcombine.low %v414_v63, %v415_v0 }
  0xa5   : > { %v452_v2 = vrot.slane %v445_v1, %v1004_v18 }
  0xa7   : > { %v459_v4 = vrot.slane %v452_v2, %v1004_v18 }
  0xa9   : > { %v461_v6 = vadd.f32 %v459_v4, %v442_v3 }
  0xab   : > { %462 = vst.msk [vmem:[#allocation2 + $0x1] ss:$4 sm:$0x3] %vm1014_vm4, %v461_v6 }
  0xb2   : > { %v488_v19 = vld [vmem:[#allocation2] sm:$0x77] }
  0xb3   : > { %489 = vst [vmem:[%s262_s6] sm:$0x77] %v488_v19 }
  0xb4 PF: > { %s18_s14 = sadd.s32 1, %s829_s14   ;;  %s1081_s9 = smov %s813_s10 }
  0xb5   : > { %p15_p9 = scmp.ge.s32.totalorder %s18_s14, 4   ;;  %s1082_s10 = smov %s817_s11 }
  0xb6   : > { %s1083_s11 = smov %s900_s21  ;;  %s1084_s12 = smov %s825_s13 }
  0xb7   : > { %s1085_s13 = smov %s1087_s16  ;;  %17 = sbr.rel (!%p15_p9) target bundleno = 6 (0x6), region = 91 }
  0xbe   :  { %519 = vsyncpa [#allocation4], 1 }
  0xbf   :  { %521 = vsyncpa [#allocation4 + $0x1], 1 }
  0xc0   :  { %522 = vsyncpa [#allocation6], 1 }
  0xc1   :  { %524 = vsyncpa [#allocation6 + $0x1], 1 }

</bundles_post_ra>
